<compile_context>
chip_gen: v7x
topology: tpu7x:2x2x1
jax: 0.10.0
libtpu: 0.0.40
codegen_flags: <defaults>
</compile_context>

<pallas_src>
import functools

import jax
import jax.numpy as jnp
from jax import lax
from jax.experimental import pallas as pl
from jax.experimental.pallas import tpu as pltpu

EPS = 1e-5
H1 = 40            # learn_features width
H2 = 45            # learn_coef width
H2P = 128          # lane-dense padded width used to stage h2 / as K of the last matmul
LANE = 128
SUBLANE = 8


def _round_up(x, m):
    return (x + m - 1) // m * m


def _vmem_limit_bytes():
    """Generation-aware scoped-VMEM budget (v7x: 64 MiB physical, v5e/v6e: 128 MiB)."""
    try:
        cap = int(pltpu.get_tpu_info().vmem_capacity_bytes)
    except Exception:
        cap = 64 * 1024 * 1024
    return max(32 * 1024 * 1024, min(100 * 1024 * 1024, int(cap * 0.6)))


# ---------------------------------------------------------------------------
# Fused call 1: three phases over batch tiles, h1/h2 resident in VMEM scratch.
#   p=0: h1 = relu(x @ W1t + b1)            -> h1 scratch, stats1
#   p=1: h2 = relu(BN1(h1) @ W2t + b2)      -> h2 scratch, stats2
#   p=2: h2n = BN2(h2)                      -> lane-dense (bm, 128) HBM output
# ---------------------------------------------------------------------------
def _stats_kernel(x_ref, w1t_ref, b1_ref, w2t_ref, b2_ref,
                  h2n_ref,
                  h1_s, h2_s, st1, st2,
                  *, valid_rows, tile_rows, n1, n2):
    p = pl.program_id(0)
    i = pl.program_id(1)

    @pl.when((p == 0) & (i == 0))
    def _init():
        st1[...] = jnp.zeros_like(st1)
        st2[...] = jnp.zeros_like(st2)

    # Batch-padding mask (boundary tile only has < tile_rows valid rows).
    row = i * tile_rows + lax.broadcasted_iota(jnp.int32, (tile_rows, 1), 0)
    rmask = row < valid_rows
    off = pl.multiple_of(i * tile_rows, SUBLANE)

    @pl.when(p == 0)
    def _phase0():                                   # Linear1 + ReLU, stats1
        h1 = jnp.dot(x_ref[...], w1t_ref[...],
                     preferred_element_type=jnp.float32) + b1_ref[...]
        h1 = jnp.maximum(h1, 0.0)
        h1_s[pl.ds(off, tile_rows), :] = h1
        hm = jnp.where(rmask, h1, 0.0)
        st1[0:1, :] += jnp.sum(hm, axis=0, keepdims=True)
        st1[1:2, :] += jnp.sum(hm * hm, axis=0, keepdims=True)

    @pl.when(p == 1)
    def _phase1():                                   # BN1 + Linear2 + ReLU, stats2
        s = jnp.sum(st1[0:1, :])
        ss = jnp.sum(st1[1:2, :])
        mean1 = s / n1
        inv1 = lax.rsqrt(ss / n1 - mean1 * mean1 + EPS)   # biased batch variance
        h1n = (h1_s[pl.ds(off, tile_rows), :] - mean1) * inv1
        h2 = jnp.dot(h1n, w2t_ref[...],
                     preferred_element_type=jnp.float32) + b2_ref[...]
        h2 = jnp.maximum(h2, 0.0)                    # zero-padded W2/b2 -> pad lanes stay 0
        h2_s[pl.ds(off, tile_rows), :] = h2
        hm = jnp.where(rmask, h2, 0.0)
        st2[0:1, :] += jnp.sum(hm, axis=0, keepdims=True)
        st2[1:2, :] += jnp.sum(hm * hm, axis=0, keepdims=True)

    @pl.when(p == 2)
    def _phase2():                                   # BN2 normalize, lane-dense stage
        s = jnp.sum(st2[0:1, :])
        ss = jnp.sum(st2[1:2, :])
        mean2 = s / n2
        inv2 = lax.rsqrt(ss / n2 - mean2 * mean2 + EPS)
        # Pad lanes become (0 - mean2)*inv2, but the matching W3 rows are zero.
        h2n_ref[...] = (h2_s[pl.ds(off, tile_rows), :] - mean2) * inv2


# ---------------------------------------------------------------------------
# Call 2: y = h2n @ W3t + b3 over a fully parallel (col-tile, batch-tile) grid.
# ---------------------------------------------------------------------------
def _out_kernel(h2n_ref, w3t_ref, b3_ref, y_ref, *, tile_rows, h2n_is_full):
    if h2n_is_full:
        i = pl.program_id(1)
        off = pl.multiple_of(i * tile_rows, SUBLANE)
        h2n = h2n_ref[pl.ds(off, tile_rows), :]
    else:
        h2n = h2n_ref[...]
    y_ref[...] = (jnp.dot(h2n, w3t_ref[...],
                          preferred_element_type=jnp.float32)
                  + b3_ref[...]).astype(y_ref.dtype)


# ---------------------------------------------------------------------------
# Parameters
# ---------------------------------------------------------------------------
def init_params(key, n_sensors, outputlayer_size):
    """Deterministic xavier_normal weights, zero biases (matches module __init__)."""
    def xavier_normal(k, fan_out, fan_in):
        std = (2.0 / (fan_in + fan_out)) ** 0.5
        return std * jax.random.normal(k, (fan_out, fan_in), dtype=jnp.float32)

    k1, k2, k3 = jax.random.split(key, 3)
    return ((xavier_normal(k1, H1, n_sensors), jnp.zeros((H1,), jnp.float32)),
            (xavier_normal(k2, H2, H1), jnp.zeros((H2,), jnp.float32)),
            (xavier_normal(k3, outputlayer_size, H2),
             jnp.zeros((outputlayer_size,), jnp.float32)))


def prepare_params(params, *, out_tile=512):
    """One-time preprocessing: transpose weights, zero-pad layer 2 to 128 lanes and
    layer 3 to a multiple of the output column tile (no per-call padding/slicing)."""
    (w1, b1), (w2, b2), (w3, b3) = params
    out_size = int(w3.shape[0])
    tn = min(_round_up(out_size, LANE), max(LANE, _round_up(out_tile, LANE)))
    out_pad = _round_up(out_size, tn)

    w2t = jnp.zeros((H1, H2P), jnp.float32).at[:, :H2].set(
        jnp.transpose(w2.astype(jnp.float32)))
    b2p = jnp.zeros((1, H2P), jnp.float32).at[0, :H2].set(b2.astype(jnp.float32))
    w3t = jnp.zeros((H2P, out_pad), jnp.float32).at[:H2, :out_size].set(
        jnp.transpose(w3.astype(jnp.float32)))
    b3p = jnp.zeros((1, out_pad), jnp.float32).at[0, :out_size].set(
        b3.astype(jnp.float32))

    return {
        "w1t": jnp.transpose(w1.astype(jnp.float32)),        # (n_sensors, H1)
        "b1": b1.astype(jnp.float32).reshape(1, H1),
        "w2t": w2t,                                          # (H1, 128)
        "b2": b2p,                                           # (1, 128)
        "w3t": w3t,                                          # (128, out_pad)
        "b3": b3p,                                           # (1, out_pad)
        "out_size": out_size,
        "out_pad": out_pad,
        "tn": tn,
    }


# ---------------------------------------------------------------------------
# Forward
# ---------------------------------------------------------------------------
def shallow_decoder_forward(x, prepared, *, batch_tile=None):
    """x: (B, 1, n_sensors) -> (B, 1, out_size), training-mode BatchNorm1d(1)."""
    B = int(x.shape[0])
    n_sensors = int(x.shape[-1])
    out_size = prepared["out_size"]
    out_pad = prepared["out_pad"]
    tn = prepared["tn"]
    nj = out_pad // tn

    x2 = x.reshape(B, n_sensors).astype(jnp.float32)

    limit = _vmem_limit_bytes()
    budget = limit - (8 << 20)

    # Batch tile (multiple of 8), sized jointly with tn against the output pass's
    # VMEM footprint (output double-buffer dominates, not the tiny x tile).
    bm = _round_up(min(batch_tile or 1024, _round_up(B, SUBLANE)), SUBLANE)
    while True:
        Bp = _round_up(B, bm)
        h2n_bytes = 2 * Bp * H2P * 4
        h2n_is_full = h2n_bytes <= budget // 2
        f3 = (2 * bm * tn * 4              # y tile (double buffered)
              + 2 * H2P * tn * 4           # W3 column tile
              + 4 * tn * 4                 # bias tile
              + (h2n_bytes if h2n_is_full else 2 * bm * H2P * 4))
        if f3 <= budget or bm <= SUBLANE:
            break
        bm = max(SUBLANE, _round_up(bm // 2, SUBLANE))

    Bp = _round_up(B, bm)
    nt = Bp // bm

    # Fused-pass scratch: whole-batch h1 + h2 resident in VMEM.
    c1 = Bp * (LANE * 4 + H2P * 4) + 2 * bm * max(n_sensors, LANE) * 4 + 2 * bm * H2P * 4
    if c1 > budget:
        # TODO(synk): add an HBM-staged fallback for batches too large to keep
        # h1/h2 in VMEM; typical shallow-decoder batches fit comfortably.
        raise ValueError(f"batch {B} too large for the fused VMEM-resident path")

    cparams_stats = pltpu.CompilerParams(
        dimension_semantics=("arbitrary", "arbitrary"),
        vmem_limit_bytes=limit)
    cparams_out = pltpu.CompilerParams(
        dimension_semantics=("parallel", "parallel"),
        vmem_limit_bytes=limit)

    # ---- fused call 1: Linear1+ReLU+stats1, BN1+Linear2+ReLU+stats2, BN2 normalize.
    h2n = pl.pallas_call(
        functools.partial(_stats_kernel, valid_rows=B, tile_rows=bm,
                          n1=float(B * H1), n2=float(B * H2)),
        grid=(3, nt),
        in_specs=[
            # x is only needed in phase 0; park on block 0 afterwards (no re-DMA).
            pl.BlockSpec((bm, n_sensors), lambda p, i: (jnp.where(p == 0, i, 0), 0)),
            pl.BlockSpec((n_sensors, H1), lambda p, i: (0, 0)),
            pl.BlockSpec((1, H1), lambda p, i: (0, 0)),
            pl.BlockSpec((H1, H2P), lambda p, i: (0, 0)),
            pl.BlockSpec((1, H2P), lambda p, i: (0, 0)),
        ],
        # Written only in phase 2; earlier phases keep the index pinned at block 0
        # so nothing is flushed before the real data lands.
        out_specs=pl.BlockSpec((bm, H2P), lambda p, i: (jnp.where(p == 2, i, 0), 0)),
        out_shape=jax.ShapeDtypeStruct((Bp, H2P), jnp.float32),
        scratch_shapes=[
            pltpu.VMEM((Bp, H1), jnp.float32),    # whole-batch h1
            pltpu.VMEM((Bp, H2P), jnp.float32),   # whole-batch h2
            pltpu.VMEM((2, H1), jnp.float32),     # stats1: [sum; sum-of-squares]
            pltpu.VMEM((2, H2P), jnp.float32),    # stats2
        ],
        compiler_params=cparams_stats,
    )(x2, prepared["w1t"], prepared["b1"], prepared["w2t"], prepared["b2"])

    # ---- call 2: y = h2n @ W3t + b3, streamed over lane-dense (bm, tn) tiles.
    # j outer / i inner: W3 column tile is fetched once per j; h2n stays resident.
    h2n_spec = (pl.BlockSpec((Bp, H2P), lambda j, i: (0, 0)) if h2n_is_full
                else pl.BlockSpec((bm, H2P), lambda j, i: (i, 0)))
    y = pl.pallas_call(
        functools.partial(_out_kernel, tile_rows=bm, h2n_is_full=h2n_is_full),
        grid=(nj, nt),
        in_specs=[
            h2n_spec,
            pl.BlockSpec((H2P, tn), lambda j, i: (0, j)),
            pl.BlockSpec((1, tn), lambda j, i: (0, j)),
        ],
        out_specs=pl.BlockSpec((bm, tn), lambda j, i: (i, j)),
        # Exact output shape: boundary-block stores beyond (B, out_size) are dropped,
        # so no post-call slice copy of the (dominant) output array is needed.
        out_shape=jax.ShapeDtypeStruct((B, out_size), jnp.float32),
        compiler_params=cparams_out,
    )(h2n, prepared["w3t"], prepared["b3"])

    return y.reshape(B, 1, out_size)


# ---------------------------------------------------------------------------
# Pure-JAX reference (training-mode BatchNorm1d(1), biased batch stats).
# ---------------------------------------------------------------------------
def _reference_forward(x, params):
    (w1, b1), (w2, b2), (w3, b3) = params
    B = x.shape[0]
    h = x.reshape(B, -1).astype(jnp.float32)

    h = jnp.maximum(h @ w1.T + b1, 0.0)
    m = jnp.mean(h)
    v = jnp.mean((h - m) ** 2)
    h = (h - m) / jnp.sqrt(v + EPS)

    h = jnp.maximum(h @ w2.T + b2, 0.0)
    m = jnp.mean(h)
    v = jnp.mean((h - m) ** 2)
    h = (h - m) / jnp.sqrt(v + EPS)

    y = h @ w3.T + b3
    return y.reshape(B, 1, -1)


if __name__ == "__main__":
    B = 20                  # not a multiple of the batch tile -> exercises masking / row boundary
    n_sensors = 32
    outputlayer_size = 192  # not a multiple of 128 -> exercises the partial output column tile

    key = jax.random.PRNGKey(0)
    kx, kp = jax.random.split(key)
    x = jax.random.normal(kx, (B, 1, n_sensors), dtype=jnp.float32)
    params = init_params(kp, n_sensors, outputlayer_size)
    y_ref = _reference_forward(x, params)

    # Small-tile config: 3 batch tiles (boundary tile masked) and 2 column tiles
    # (boundary column tile partially out of bounds).
    prep_small = prepare_params(params, out_tile=128)
    y1 = jax.block_until_ready(shallow_decoder_forward(x, prep_small, batch_tile=8))

    # Default config: single batch tile, single column tile.
    prep = prepare_params(params)
    y2 = jax.block_until_ready(shallow_decoder_forward(x, prep))

    assert y1.shape == (B, 1, outputlayer_size)
    assert y2.shape == (B, 1, outputlayer_size)
    # NOTE: kernel and reference both use the TPU's default MXU precision for f32
    # matmuls and the same op ordering, so errors correlate; vs a strict fp32 CPU
    # reference the tolerance would need to be looser (or precision=HIGHEST used).
    assert jnp.allclose(y1, y_ref, atol=1e-3, rtol=1e-3), "mismatch vs reference (small tiles)"
    assert jnp.allclose(y2, y_ref, atol=1e-3, rtol=1e-3), "mismatch vs reference (default tiles)"

    print("KERNEL_OK")
</pallas_src>

<mosaic_0001>
module attributes {stable_mosaic.version = 11 : i64} {
  func.func @_stats_kernel(%arg0: i32, %arg1: i32, %arg2: memref<8x32xf32, #tpu.memory_space<vmem>>, %arg3: memref<32x40xf32, #tpu.memory_space<vmem>>, %arg4: memref<1x40xf32, #tpu.memory_space<vmem>>, %arg5: memref<40x128xf32, #tpu.memory_space<vmem>>, %arg6: memref<1x128xf32, #tpu.memory_space<vmem>>, %arg7: memref<8x128xf32, #tpu.memory_space<vmem>>, %arg8: memref<24x40xf32, #tpu.memory_space<vmem>>, %arg9: memref<24x128xf32, #tpu.memory_space<vmem>>, %arg10: memref<2x40xf32, #tpu.memory_space<vmem>>, %arg11: memref<2x128xf32, #tpu.memory_space<vmem>>) attributes {dimension_semantics = [#tpu.dimension_semantics<arbitrary>, #tpu.dimension_semantics<arbitrary>], iteration_bounds = array<i64: 3, 3>, scalar_prefetch = 0 : i64, scratch_operands = 4 : i64, tpu.core_type = #tpu.core_type<tc>, window_params = [{transform_indices = @transform_0, window_bounds = array<i64: 8, 32>}, {pipeline_mode = #tpu.pipeline_mode<synchronous>, transform_indices = @transform_1, window_bounds = array<i64: 32, 40>}, {pipeline_mode = #tpu.pipeline_mode<synchronous>, transform_indices = @transform_2, window_bounds = array<i64: 1, 40>}, {pipeline_mode = #tpu.pipeline_mode<synchronous>, transform_indices = @transform_3, window_bounds = array<i64: 40, 128>}, {pipeline_mode = #tpu.pipeline_mode<synchronous>, transform_indices = @transform_4, window_bounds = array<i64: 1, 128>}, {transform_indices = @transform_5, window_bounds = array<i64: 8, 128>}]} {
    %c0_i32 = arith.constant 0 : i32
    %0 = arith.cmpi eq, %arg0, %c0_i32 : i32
    %c0_i32_0 = arith.constant 0 : i32
    %1 = arith.cmpi eq, %arg1, %c0_i32_0 : i32
    %2 = arith.andi %0, %1 : i1
    %3 = arith.extui %2 : i1 to i32
    %c0_i32_1 = arith.constant 0 : i32
    %4 = arith.cmpi ne, %3, %c0_i32_1 : i32
    scf.if %4 {
      %cst = arith.constant 0.000000e+00 : f32
      %22 = vector.broadcast %cst : f32 to vector<2x40xf32>
      %c0 = arith.constant 0 : index
      %c0_7 = arith.constant 0 : index
      %23 = vector.load %arg10[%c0, %c0_7] : memref<2x40xf32, #tpu.memory_space<vmem>>, vector<2x40xf32>
      tpu.vector_store %arg10[%c0, %c0_7], %22 {strides = array<i32>} : memref<2x40xf32, #tpu.memory_space<vmem>>, vector<2x40xf32>,
      %cst_8 = arith.constant 0.000000e+00 : f32
      %24 = vector.broadcast %cst_8 : f32 to vector<2x128xf32>
      %c0_9 = arith.constant 0 : index
      %c0_10 = arith.constant 0 : index
      %25 = vector.load %arg11[%c0_9, %c0_10] : memref<2x128xf32, #tpu.memory_space<vmem>>, vector<2x128xf32>
      tpu.vector_store %arg11[%c0_9, %c0_10], %24 {strides = array<i32>} : memref<2x128xf32, #tpu.memory_space<vmem>>, vector<2x128xf32>,
    } else {
    }
    %c8_i32 = arith.constant 8 : i32
    %5 = arith.muli %arg1, %c8_i32 : i32
    %6 = tpu.iota {dimensions = array<i32: 0>} : vector<8x1xi32>
    %7 = vector.broadcast %5 : i32 to vector<8x1xi32>
    %8 = arith.addi %7, %6 : vector<8x1xi32>
    %c20_i32 = arith.constant 20 : i32
    %9 = vector.broadcast %c20_i32 : i32 to vector<8x1xi32>
    %10 = arith.cmpi slt, %8, %9 : vector<8x1xi32>
    %c8_i32_2 = arith.constant 8 : i32
    %11 = arith.muli %arg1, %c8_i32_2 : i32
    %12 = tpu.assume_multiple %11, 8 : i32
    %c0_i32_3 = arith.constant 0 : i32
    %13 = arith.cmpi eq, %arg0, %c0_i32_3 : i32
    %14 = arith.extui %13 : i1 to i32
    %c0_i32_4 = arith.constant 0 : i32
    %15 = arith.cmpi ne, %14, %c0_i32_4 : i32
    scf.if %15 {
      %c0 = arith.constant 0 : index
      %c0_7 = arith.constant 0 : index
      %22 = vector.load %arg2[%c0, %c0_7] : memref<8x32xf32, #tpu.memory_space<vmem>>, vector<8x32xf32>
      %c0_8 = arith.constant 0 : index
      %c0_9 = arith.constant 0 : index
      %23 = vector.load %arg3[%c0_8, %c0_9] : memref<32x40xf32, #tpu.memory_space<vmem>>, vector<32x40xf32>
      %cst = arith.constant dense<0.000000e+00> : vector<8x40xf32>
      %24 = tpu.matmul %22, %23, %cst {dimension_numbers = #tpu.dot_dimension_numbers<[1], [0], [0], [1], [0, 0, 1, 1], [], []>} : vector<8x32xf32>, vector<32x40xf32>, vector<8x40xf32> -> vector<8x40xf32>
      %c0_10 = arith.constant 0 : index
      %c0_11 = arith.constant 0 : index
      %25 = vector.load %arg4[%c0_10, %c0_11] : memref<1x40xf32, #tpu.memory_space<vmem>>, vector<1x40xf32>
      %26 = vector.broadcast %25 : vector<1x40xf32> to vector<8x40xf32>
      %27 = arith.addf %24, %26 : vector<8x40xf32>
      %cst_12 = arith.constant 0.000000e+00 : f32
      %28 = vector.broadcast %cst_12 : f32 to vector<8x40xf32>
      %29 = arith.maximumf %27, %28 : vector<8x40xf32>
      %30 = arith.index_cast %12 : i32 to index
      %c0_13 = arith.constant 0 : index
      %31 = vector.load %arg8[%30, %c0_13] : memref<24x40xf32, #tpu.memory_space<vmem>>, vector<8x40xf32>
      tpu.vector_store %arg8[%30, %c0_13], %29 {strides = array<i32>} : memref<24x40xf32, #tpu.memory_space<vmem>>, vector<8x40xf32>,
      %cst_14 = arith.constant 0.000000e+00 : f32
      %32 = vector.shape_cast %10 : vector<8x1xi1> to vector<8x1xi1>
      %33 = vector.broadcast %32 : vector<8x1xi1> to vector<8x40xi1>
      %34 = vector.broadcast %cst_14 : f32 to vector<8x40xf32>
      %35 = arith.select %33, %29, %34 : vector<8x40xi1>, vector<8x40xf32>
      %c0_15 = arith.constant 0 : index
      %c0_16 = arith.constant 0 : index
      %36 = vector.load %arg10[%c0_15, %c0_16] : memref<2x40xf32, #tpu.memory_space<vmem>>, vector<1x40xf32>
      %cst_17 = arith.constant dense<0.000000e+00> : vector<40xf32>
      %37 = vector.multi_reduction <add>, %35, %cst_17 [0] : vector<8x40xf32> to vector<40xf32>
      %38 = vector.shape_cast %37 : vector<40xf32> to vector<1x40xf32>
      %39 = arith.addf %36, %38 : vector<1x40xf32>
      %c0_18 = arith.constant 0 : index
      %c0_19 = arith.constant 0 : index
      %40 = vector.load %arg10[%c0_18, %c0_19] : memref<2x40xf32, #tpu.memory_space<vmem>>, vector<1x40xf32>
      tpu.vector_store %arg10[%c0_18, %c0_19], %39 {strides = array<i32>} : memref<2x40xf32, #tpu.memory_space<vmem>>, vector<1x40xf32>,
      %c1 = arith.constant 1 : index
      %c0_20 = arith.constant 0 : index
      %41 = vector.load %arg10[%c1, %c0_20] : memref<2x40xf32, #tpu.memory_space<vmem>>, vector<1x40xf32>
      %42 = arith.mulf %35, %35 : vector<8x40xf32>
      %cst_21 = arith.constant dense<0.000000e+00> : vector<40xf32>
      %43 = vector.multi_reduction <add>, %42, %cst_21 [0] : vector<8x40xf32> to vector<40xf32>
      %44 = vector.shape_cast %43 : vector<40xf32> to vector<1x40xf32>
      %45 = arith.addf %41, %44 : vector<1x40xf32>
      %c1_22 = arith.constant 1 : index
      %c0_23 = arith.constant 0 : index
      %46 = vector.load %arg10[%c1_22, %c0_23] : memref<2x40xf32, #tpu.memory_space<vmem>>, vector<1x40xf32>
      tpu.vector_store %arg10[%c1_22, %c0_23], %45 {strides = array<i32>} : memref<2x40xf32, #tpu.memory_space<vmem>>, vector<1x40xf32>,
    } else {
    }
    %c1_i32 = arith.constant 1 : i32
    %16 = arith.cmpi eq, %arg0, %c1_i32 : i32
    %17 = arith.extui %16 : i1 to i32
    %c0_i32_5 = arith.constant 0 : i32
    %18 = arith.cmpi ne, %17, %c0_i32_5 : i32
    scf.if %18 {
      %c0 = arith.constant 0 : index
      %c0_7 = arith.constant 0 : index
      %22 = vector.load %arg10[%c0, %c0_7] : memref<2x40xf32, #tpu.memory_space<vmem>>, vector<1x40xf32>
      %23 = vector.shape_cast %22 : vector<1x40xf32> to vector<1x1x40xf32>
      %cst = arith.constant dense<0.000000e+00> : vector<1xf32>
      %24 = vector.multi_reduction <add>, %23, %cst [1, 2] : vector<1x1x40xf32> to vector<1xf32>
      %25 = vector.shape_cast %24 : vector<1xf32> to vector<1x1x1xf32>
      %26 = vector.extract %25[0, 0, 0] : f32 from vector<1x1x1xf32>
      %c1 = arith.constant 1 : index
      %c0_8 = arith.constant 0 : index
      %27 = vector.load %arg10[%c1, %c0_8] : memref<2x40xf32, #tpu.memory_space<vmem>>, vector<1x40xf32>
      %28 = vector.shape_cast %27 : vector<1x40xf32> to vector<1x1x40xf32>
      %cst_9 = arith.constant dense<0.000000e+00> : vector<1xf32>
      %29 = vector.multi_reduction <add>, %28, %cst_9 [1, 2] : vector<1x1x40xf32> to vector<1xf32>
      %30 = vector.shape_cast %29 : vector<1xf32> to vector<1x1x1xf32>
      %31 = vector.extract %30[0, 0, 0] : f32 from vector<1x1x1xf32>
      %cst_10 = arith.constant 8.000000e+02 : f32
      %32 = arith.divf %26, %cst_10 : f32
      %cst_11 = arith.constant 8.000000e+02 : f32
      %33 = arith.divf %31, %cst_11 : f32
      %34 = arith.mulf %32, %32 : f32
      %35 = arith.subf %33, %34 : f32
      %cst_12 = arith.constant 9.99999974E-6 : f32
      %36 = arith.addf %35, %cst_12 : f32
      %37 = math.rsqrt %36 : f32
      %38 = arith.index_cast %12 : i32 to index
      %c0_13 = arith.constant 0 : index
      %39 = vector.load %arg8[%38, %c0_13] : memref<24x40xf32, #tpu.memory_space<vmem>>, vector<8x40xf32>
      %40 = vector.broadcast %32 : f32 to vector<8x40xf32>
      %41 = arith.subf %39, %40 : vector<8x40xf32>
      %42 = vector.broadcast %37 : f32 to vector<8x40xf32>
      %43 = arith.mulf %41, %42 : vector<8x40xf32>
      %c0_14 = arith.constant 0 : index
      %c0_15 = arith.constant 0 : index
      %44 = vector.load %arg5[%c0_14, %c0_15] : memref<40x128xf32, #tpu.memory_space<vmem>>, vector<40x128xf32>
      %cst_16 = arith.constant dense<0.000000e+00> : vector<8x128xf32>
      %45 = tpu.matmul %43, %44, %cst_16 {dimension_numbers = #tpu.dot_dimension_numbers<[1], [0], [0], [1], [0, 0, 1, 1], [], []>} : vector<8x40xf32>, vector<40x128xf32>, vector<8x128xf32> -> vector<8x128xf32>
      %c0_17 = arith.constant 0 : index
      %c0_18 = arith.constant 0 : index
      %46 = vector.load %arg6[%c0_17, %c0_18] : memref<1x128xf32, #tpu.memory_space<vmem>>, vector<1x128xf32>
      %47 = vector.broadcast %46 : vector<1x128xf32> to vector<8x128xf32>
      %48 = arith.addf %45, %47 : vector<8x128xf32>
      %cst_19 = arith.constant 0.000000e+00 : f32
      %49 = vector.broadcast %cst_19 : f32 to vector<8x128xf32>
      %50 = arith.maximumf %48, %49 : vector<8x128xf32>
      %51 = arith.index_cast %12 : i32 to index
      %c0_20 = arith.constant 0 : index
      %52 = vector.load %arg9[%51, %c0_20] : memref<24x128xf32, #tpu.memory_space<vmem>>, vector<8x128xf32>
      tpu.vector_store %arg9[%51, %c0_20], %50 {strides = array<i32>} : memref<24x128xf32, #tpu.memory_space<vmem>>, vector<8x128xf32>,
      %cst_21 = arith.constant 0.000000e+00 : f32
      %53 = vector.shape_cast %10 : vector<8x1xi1> to vector<8x1xi1>
      %54 = vector.broadcast %53 : vector<8x1xi1> to vector<8x128xi1>
      %55 = vector.broadcast %cst_21 : f32 to vector<8x128xf32>
      %56 = arith.select %54, %50, %55 : vector<8x128xi1>, vector<8x128xf32>
      %c0_22 = arith.constant 0 : index
      %c0_23 = arith.constant 0 : index
      %57 = vector.load %arg11[%c0_22, %c0_23] : memref<2x128xf32, #tpu.memory_space<vmem>>, vector<1x128xf32>
      %cst_24 = arith.constant dense<0.000000e+00> : vector<128xf32>
      %58 = vector.multi_reduction <add>, %56, %cst_24 [0] : vector<8x128xf32> to vector<128xf32>
      %59 = vector.shape_cast %58 : vector<128xf32> to vector<1x128xf32>
      %60 = arith.addf %57, %59 : vector<1x128xf32>
      %c0_25 = arith.constant 0 : index
      %c0_26 = arith.constant 0 : index
      %61 = vector.load %arg11[%c0_25, %c0_26] : memref<2x128xf32, #tpu.memory_space<vmem>>, vector<1x128xf32>
      tpu.vector_store %arg11[%c0_25, %c0_26], %60 {strides = array<i32>} : memref<2x128xf32, #tpu.memory_space<vmem>>, vector<1x128xf32>,
      %c1_27 = arith.constant 1 : index
      %c0_28 = arith.constant 0 : index
      %62 = vector.load %arg11[%c1_27, %c0_28] : memref<2x128xf32, #tpu.memory_space<vmem>>, vector<1x128xf32>
      %63 = arith.mulf %56, %56 : vector<8x128xf32>
      %cst_29 = arith.constant dense<0.000000e+00> : vector<128xf32>
      %64 = vector.multi_reduction <add>, %63, %cst_29 [0] : vector<8x128xf32> to vector<128xf32>
      %65 = vector.shape_cast %64 : vector<128xf32> to vector<1x128xf32>
      %66 = arith.addf %62, %65 : vector<1x128xf32>
      %c1_30 = arith.constant 1 : index
      %c0_31 = arith.constant 0 : index
      %67 = vector.load %arg11[%c1_30, %c0_31] : memref<2x128xf32, #tpu.memory_space<vmem>>, vector<1x128xf32>
      tpu.vector_store %arg11[%c1_30, %c0_31], %66 {strides = array<i32>} : memref<2x128xf32, #tpu.memory_space<vmem>>, vector<1x128xf32>,
    } else {
    }
    %c2_i32 = arith.constant 2 : i32
    %19 = arith.cmpi eq, %arg0, %c2_i32 : i32
    %20 = arith.extui %19 : i1 to i32
    %c0_i32_6 = arith.constant 0 : i32
    %21 = arith.cmpi ne, %20, %c0_i32_6 : i32
    scf.if %21 {
      %c0 = arith.constant 0 : index
      %c0_7 = arith.constant 0 : index
      %22 = vector.load %arg11[%c0, %c0_7] : memref<2x128xf32, #tpu.memory_space<vmem>>, vector<1x128xf32>
      %23 = vector.shape_cast %22 : vector<1x128xf32> to vector<1x1x128xf32>
      %cst = arith.constant dense<0.000000e+00> : vector<1xf32>
      %24 = vector.multi_reduction <add>, %23, %cst [1, 2] : vector<1x1x128xf32> to vector<1xf32>
      %25 = vector.shape_cast %24 : vector<1xf32> to vector<1x1x1xf32>
      %26 = vector.extract %25[0, 0, 0] : f32 from vector<1x1x1xf32>
      %c1 = arith.constant 1 : index
      %c0_8 = arith.constant 0 : index
      %27 = vector.load %arg11[%c1, %c0_8] : memref<2x128xf32, #tpu.memory_space<vmem>>, vector<1x128xf32>
      %28 = vector.shape_cast %27 : vector<1x128xf32> to vector<1x1x128xf32>
      %cst_9 = arith.constant dense<0.000000e+00> : vector<1xf32>
      %29 = vector.multi_reduction <add>, %28, %cst_9 [1, 2] : vector<1x1x128xf32> to vector<1xf32>
      %30 = vector.shape_cast %29 : vector<1xf32> to vector<1x1x1xf32>
      %31 = vector.extract %30[0, 0, 0] : f32 from vector<1x1x1xf32>
      %cst_10 = arith.constant 9.000000e+02 : f32
      %32 = arith.divf %26, %cst_10 : f32
      %cst_11 = arith.constant 9.000000e+02 : f32
      %33 = arith.divf %31, %cst_11 : f32
      %34 = arith.mulf %32, %32 : f32
      %35 = arith.subf %33, %34 : f32
      %cst_12 = arith.constant 9.99999974E-6 : f32
      %36 = arith.addf %35, %cst_12 : f32
      %37 = math.rsqrt %36 : f32
      %38 = arith.index_cast %12 : i32 to index
      %c0_13 = arith.constant 0 : index
      %39 = vector.load %arg9[%38, %c0_13] : memref<24x128xf32, #tpu.memory_space<vmem>>, vector<8x128xf32>
      %40 = vector.broadcast %32 : f32 to vector<8x128xf32>
      %41 = arith.subf %39, %40 : vector<8x128xf32>
      %42 = vector.broadcast %37 : f32 to vector<8x128xf32>
      %43 = arith.mulf %41, %42 : vector<8x128xf32>
      %c0_14 = arith.constant 0 : index
      %c0_15 = arith.constant 0 : index
      %44 = vector.load %arg7[%c0_14, %c0_15] : memref<8x128xf32, #tpu.memory_space<vmem>>, vector<8x128xf32>
      tpu.vector_store %arg7[%c0_14, %c0_15], %43 {strides = array<i32>} : memref<8x128xf32, #tpu.memory_space<vmem>>, vector<8x128xf32>,
    } else {
    }
    return
  }
  func.func @transform_0(%arg0: i32, %arg1: i32) -> (i32, i32) {
    %c0_i32 = arith.constant 0 : i32
    %0 = arith.cmpi eq, %arg0, %c0_i32 : i32
    %c0_i32_0 = arith.constant 0 : i32
    %1 = arith.select %0, %arg1, %c0_i32_0 : i32
    %c0_i32_1 = arith.constant 0 : i32
    %c0_i32_2 = arith.constant 0 : i32
    return %1, %c0_i32_1 : i32, i32
  }
  func.func @transform_1(%arg0: i32, %arg1: i32) -> (i32, i32) {
    %c0_i32 = arith.constant 0 : i32
    %c0_i32_0 = arith.constant 0 : i32
    %c0_i32_1 = arith.constant 0 : i32
    return %c0_i32, %c0_i32_0 : i32, i32
  }
  func.func @transform_2(%arg0: i32, %arg1: i32) -> (i32, i32) {
    %c0_i32 = arith.constant 0 : i32
    %c0_i32_0 = arith.constant 0 : i32
    %c0_i32_1 = arith.constant 0 : i32
    return %c0_i32, %c0_i32_0 : i32, i32
  }
  func.func @transform_3(%arg0: i32, %arg1: i32) -> (i32, i32) {
    %c0_i32 = arith.constant 0 : i32
    %c0_i32_0 = arith.constant 0 : i32
    %c0_i32_1 = arith.constant 0 : i32
    return %c0_i32, %c0_i32_0 : i32, i32
  }
  func.func @transform_4(%arg0: i32, %arg1: i32) -> (i32, i32) {
    %c0_i32 = arith.constant 0 : i32
    %c0_i32_0 = arith.constant 0 : i32
    %c0_i32_1 = arith.constant 0 : i32
    return %c0_i32, %c0_i32_0 : i32, i32
  }
  func.func @transform_5(%arg0: i32, %arg1: i32) -> (i32, i32) {
    %c2_i32 = arith.constant 2 : i32
    %0 = arith.cmpi eq, %arg0, %c2_i32 : i32
    %c0_i32 = arith.constant 0 : i32
    %1 = arith.select %0, %arg1, %c0_i32 : i32
    %c0_i32_0 = arith.constant 0 : i32
    %c0_i32_1 = arith.constant 0 : i32
    return %1, %c0_i32_0 : i32, i32
  }
}

</mosaic_0001>

<bundles_post_ra>
// kernel: tpu_custom_call.1
= control target key start
LH: loop header
LB: loop body
LE: loop exit
PB: predicated region body
PF: predicated region fallthrough
CT: control target
= control target key end

     0   :  { %s1558_s0 = inlined_call_operand.hbm [shape: f32[20,32], index: 0, kind: input, shape index: {}]   ;;  %s1559_s1 = inlined_call_operand.hbm [shape: f32[32,40], index: 1, kind: input, shape index: {}]   ;;  %s1560_s2 = inlined_call_operand.vmem [shape: f32[1,40], index: 2, kind: input, shape index: {}]   ;;  %s1561_s3 = inlined_call_operand.hbm [shape: f32[40,128], index: 3, kind: input, shape index: {}]   ;;  %s1562_s4 = inlined_call_operand.vmem [shape: f32[1,128], index: 4, kind: input, shape index: {}]   ;;  %s1563_s5 = inlined_call_operand.hbm [shape: f32[24,128], index: 5, kind: output, shape index: {}]  }
   0x1   :  { %1576 = sst [smem:[#allocation21_spill]] %s1559_s1 }
   0x2   :  { %1577 = sst [smem:[#allocation22_spill]] %s1561_s3 }
   0x3   :  { %1578 = sst [smem:[#allocation23_spill]] %s1562_s4 }
   0x4   :  { %1579 = sst [smem:[#allocation24_spill]] %s1563_s5 }
   0x5   :  { %10 = vsyncpa [#allocation7], 0 }
   0x6   :  { %12 = vsyncpa [#allocation7 + $0x1], 0 }
   0x7   :  { %13 = vsyncpa [#allocation10], 0 }
   0x8   :  { %14 = vsyncpa [#allocation8], 0 }
   0x9   :  { %16 = vsyncpa [#allocation8 + $0x1], 0  ;;  %s1231_s18 = smov 0   ;;  %s1233_s19 = smov 0  }
   0xa   :  { %s1235_s20 = smov 0   ;;  %s1237_s21 = smov 0  }
   0xb   :  { %s1239_s22 = smov 0   ;;  %s1241_s23 = smov 0  }
   0xc   :  { %s1243_s24 = smov 0   ;;  %s1245_s25 = smov 0  }
   0xd   :  { %s1247_s26 = smov 0   ;;  %s1249_s27 = smov 0  }
   0xe   :  { %s1251_s28 = smov 0  }
   0xf LB: > { %1580 = sst [smem:[#allocation16_spill]] %s1146_s18  ;;  %s754_s29 = sadd.s32 4294967295, %s1186_s28   ;;  %s1186_s28 = sphi %s1251_s28, %s22_s28   ;;  %s1182_s27 = sphi %s1249_s27, %s1607_s27   ;;  %s1178_s26 = sphi %s1247_s26, %s1615_s26   ;;  %s1174_s25 = sphi %s1245_s25, %s1606_s25   ;;  %s1170_s24 = sphi %s1243_s24, %s1614_s24   ;;  %s1166_s23 = sphi %s1241_s23, %s1613_s23   ;;  %s1162_s22 = sphi %s1239_s22, %s1612_s22   ;;  %s1158_s21 = sphi %s1237_s21, %s1611_s21   ;;  %s1154_s20 = sphi %s1235_s20, %s1610_s20   ;;  %s1150_s19 = sphi %s1233_s19, %s1609_s19   ;;  %s1146_s18 = sphi %s1231_s18, %s1608_s18  }
  0x10   : > { %1581 = sst [smem:[#allocation17_spill]] %s1182_s27  ;;  %s755_s30 = sadd.s32 4294967294, %s1186_s28  }
  0x11   : > { %p58_p0 = scmp.ne.s32.totalorder %s1162_s22, %s1158_s21  ;;  %p1287_p1 = scmp.eq.s32.totalorder %s754_s29, 0 }
  0x12   : > { %p169_p2 = scmp.ne.s32.totalorder %s1154_s20, %s1150_s19  ;;  %p170_p3 = scmp.eq.s32.totalorder %s754_s29, 8 }
  0x13   : > { %s1582_s6 = scalar_select %p1287_p1, 1, 0 }
  0x14   : > { %p1295_p4 = por %p1287_p1, %p58_p0  ;;  %p175_p5 = scmp.ne.s32.totalorder %s1150_s19, %s1146_s18 }
  0x15   : > { %p1301_p6 = por %p170_p3, %p169_p2  ;;  %p176_p7 = scmp.eq.s32.totalorder %s755_s30, 8 }
  0x16   : > { %s1583_s7 = scalar_select %p1295_p4, 1, 0 }
  0x17   : > { %s1584_s8 = scalar_select %p1301_p6, 1, 0 }
  0x18   : > { %p756_p8 = scmp.ge.s32.totalorder %s1186_s28, 1  ;;  %p183_p9 = scmp.lt.s32.totalorder %s1186_s28, 10 }
  0x19   : > { %1585 = sst [smem:[#allocation18_spill]] %s1584_s8  ;;  %p1307_p10 = por %p176_p7, %p175_p5 }
  0x1a   : > { %p1311_p11 = pnand %p756_p8, %p183_p9  ;;  %s1188_s11 = smov [#allocation9]  }
  0x1b   : > { %s1586_s9 = scalar_select %p1307_p10, 1, 0 }
  0x1c   : > { %s1588_s10 = scalar_select %p1311_p11, 1, 0 }
  0x1d   : > { %1587 = sst [smem:[#allocation19_spill]] %s1586_s9  ;;  %s195_s12 = sshll.u32 %s1188_s11, 4  ;;  %s196_s12 = int_to_ptr.vmem [resolvable:$true] %s195_s12 }
  0x1e   : > { %p850_p12 = pneg %p1311_p11  ;;  %s1189_s14 = smov [#allocation11]  }
  0x1f   : > { %s211_s15 = sshll.u32 %s1189_s14, 4  ;;  %s1590_s1 = sld [smem:[#allocation21_spill]]  ;;  %s1323_s15 = int_to_ptr.vmem [resolvable:$true] %s211_s15 }
  0x20   : > { %p1319_p13 = pnand %p850_p12, %p1287_p1 }
  0x22   : > { %p976_p2 = pneg %p1319_p13 }
  0x25   : > { %s974_s21 = scalar_lea.hbm %s1590_s1, 512 }
  0x26   : > { %p975_p0 = scmp.ne.s32.totalorder %s1590_s1, %s974_s21  ;;  %p981_p7 = scmp.lt.u32.totalorder %s974_s21, %s1590_s1 }
  0x28   : > { %p977_p3 = pnand %p976_p2, %p975_p0 }
  0x2a   : > { %p978_p5 = pneg %p977_p3 }
  0x2c   : > { %p983_p8 = pnand %p981_p7, %p978_p5 }
  0x2e   : > { %986 = shalt.err (!%p983_p8)
}
  0x2f   : > { %s987_s14 = scalar_lea.vmem %s196_s12, 512  ;;  %p995_p6 = scmp.lt.s32.totalorder %s196_s12, %s196_s12 }
  0x30   : > { %p988_p9 = scmp.ne.s32.totalorder %s196_s12, %s987_s14  ;;  %p996_p1 = scmp.lt.s32.totalorder %s987_s14, %s987_s14 }
  0x32   : > { %p990_p12 = pnand %p988_p9, %p976_p2  ;;  %p997_p4 = por %p996_p1, %p995_p6 }
  0x34   : > { %p991_p10 = pneg %p990_p12 }
  0x36   : > { %p998_p11 = pnand %p997_p4, %p991_p10 }
  0x38   : > { %1001 = shalt.err (!%p998_p11)
}
  0x39   : > { %s1190_s16 = smov 128   ;;  %s1191_s17 = smov 8  }
  0x3a   : > { %853 = dma.hbm_to_vmem [thread:$0]  (!%p1319_p13), %s1590_s1, 512, %s196_s12, [#allocation10], %s1190_s16, %s1190_s16, %s1191_s17  }
  0x3b   : > { %s1591_s3 = sld [smem:[#allocation22_spill]] }
  0x41   : > { %s1002_s11 = scalar_lea.hbm %s1591_s3, 640 }
  0x42   : > { %p1003_p0 = scmp.ne.s32.totalorder %s1591_s3, %s1002_s11  ;;  %p1009_p6 = scmp.lt.u32.totalorder %s1002_s11, %s1591_s3 }
  0x44   : > { %p1005_p1 = pnand %p1003_p0, %p976_p2 }
  0x46   : > { %p1006_p4 = pneg %p1005_p1 }
  0x48   : > { %p1011_p10 = pnand %p1009_p6, %p1006_p4 }
  0x4a   : > { %1014 = shalt.err (!%p1011_p10)
}
  0x4b   : > { %s1015_s12 = scalar_lea.vmem %s1323_s15, 640  ;;  %p1023_p7 = scmp.lt.s32.totalorder %s1323_s15, %s1323_s15 }
  0x4c   : > { %p1016_p11 = scmp.ne.s32.totalorder %s1323_s15, %s1015_s12  ;;  %p1024_p8 = scmp.lt.s32.totalorder %s1015_s12, %s1015_s12 }
  0x4e   : > { %p1018_p3 = pnand %p1016_p11, %p976_p2  ;;  %p1025_p9 = por %p1024_p8, %p1023_p7 }
  0x50   : > { %p1019_p5 = pneg %p1018_p3 }
  0x52   : > { %p1026_p12 = pnand %p1025_p9, %p1019_p5 }
  0x54   : > { %1029 = shalt.err (!%p1026_p12)
}
  0x55   : > { %856 = dma.hbm_to_vmem [thread:$0]  (!%p1319_p13), %s1591_s3, 640, %s1323_s15, [#allocation10], %s1190_s16, %s1190_s16, %s1191_s17  }
  0x56   : > { %s31_s8 = sadd.s32 1, %s1178_s26  ;;  %s34_s13 = sadd.s32 1, %s1182_s27 }
  0x57   : > { %p32_p2 = scmp.ge.s32.totalorder %s31_s8, 3  ;;  %p38_p0 = scmp.eq.s32.totalorder %s1182_s27, 0 }
  0x58   : > { %s45_s9 = sadd.s32 1, %s1166_s23  ;;  %p52_p4 = scmp.ne.s32.totalorder %s1166_s23, %s1162_s22 }
  0x59   : > { %s1617_s8 = smov (%p32_p2, %s31_s8), 0  ;;  %s1619_s13 = smov (!%p32_p2, %s34_s13), %s1182_s27 }
  0x5a   : > { %s39_s21 = scalar_select %p38_p0, %s1178_s26, 0 }
  0x5b   : > { %p36_p1 = scmp.ge.s32.totalorder %s1619_s13, 3  ;;  %p53_p6 = scmp.eq.s32.totalorder %s1186_s28, 0 }
  0x5c   : > { %p152_p10 = scmp.eq.s32.totalorder %s1182_s27, 2  ;;  %s159_s16 = sadd.s32 1, %s1154_s20 }
  0x5d   : > { %s1621_s13 = smov (%p36_p1, %s1619_s13), 0  ;;  %p1386_p13 = por %p53_p6, %p52_p4 }
  0x5e   : > { %1592 = sst [smem:[#allocation20_spill]] %s1621_s13  ;;  %p40_p11 = scmp.eq.s32.totalorder %s1621_s13, 0 }
  0x5f   : > { %p154_p3 = scmp.eq.s32.totalorder %s1621_s13, 2  ;;  %p867_p5 = scmp.lt.s32.totalorder %s1186_s28, 9 }
  0x60   : > { %s153_s17 = scalar_select %p152_p10, %s1178_s26, 0 }
  0x61   : > { %s41_s29 = scalar_select %p40_p11, %s1617_s8, 0 }
  0x62   : > { %s155_s30 = scalar_select %p154_p3, %s1617_s8, 0 }
  0x63   : > { %s42_s11 = ssub.s32 %s39_s21, %s41_s29  ;;  %s228_s12 = sand.u32 1, %s1166_s23  }
  0x64   : > { %p43_p7 = scmp.eq.s32.totalorder %s42_s11, 0  ;;  %s156_s14 = ssub.s32 %s153_s17, %s155_s30 }
  0x65   : > { %p157_p8 = scmp.eq.s32.totalorder %s156_s14, 0  ;;  %s760_s1 = sshll.u32 %s228_s12, 3 }
  0x66   : > { %s1399_s5 = scalar_select %p43_p7, %s1166_s23, %s45_s9  }
  0x67   : > { %s1402_s18 = scalar_select %p157_p8, %s1154_s20, %s159_s16  }
  0x68   : > { %s761_s3 = sshll.u32 %s39_s21, 7  ;;  %s232_s29 = scalar_lea.vmem [#allocation6], %s760_s1 }
  0x69   : > { %s1407_s13 = scalar_lea.hbm %s1558_s0, %s761_s3  ;;  %s241_s11 = sshll.u32 %s232_s29, 4  ;;  %s1409_s11 = int_to_ptr.vmem [resolvable:$true] %s241_s11 }
  0x6a   : > { %p1415_p9 = pnand %p867_p5, %p1386_p13  ;;  %s229_s21 = scalar_lea.sflag [#allocation7], %s228_s12 }
  0x6b   : > { %s1030_s4 = scalar_lea.hbm %s1407_s13, 128  ;;  %s1035_s27 = scalar_lea.hbm %s1558_s0, 384 }
  0x6c   : > { %p1031_p12 = scmp.ne.s32.totalorder %s1407_s13, %s1030_s4  ;;  %p1032_p2 = pneg %p1415_p9 }
  0x6d   : > { %p1036_p4 = scmp.lt.u32.totalorder %s1407_s13, %s1558_s0  ;;  %p1037_p6 = scmp.lt.u32.totalorder %s1035_s27, %s1030_s4 }
  0x6e   : > { %p1033_p0 = pnand %p1032_p2, %p1031_p12  ;;  %p1039_p13 = scmp.lt.u32.totalorder %s1030_s4, %s1407_s13 }
  0x6f   : > { %p1038_p10 = por %p1037_p6, %p1036_p4 }
  0x70   : > { %p1034_p1 = pneg %p1033_p0 }
  0x71   : > { %p1040_p11 = por %p1039_p13, %p1038_p10 }
  0x73   : > { %p1041_p3 = pnand %p1040_p11, %p1034_p1 }
  0x75   : > { %1044 = shalt.err (!%p1041_p3)
}
  0x76   : > { %s1045_s17 = scalar_lea.vmem %s1409_s11, 128  ;;  %s1192_s30 = smov [#allocation6]  }
  0x77   : > { %p1046_p5 = scmp.ne.s32.totalorder %s1409_s11, %s1045_s17  ;;  %s1050_s14 = sshll.u32 %s1192_s30, 4  ;;  %s1051_s14 = int_to_ptr.vmem [resolvable:$false] %s1050_s14 }
  0x78   : > { %s1052_s12 = scalar_lea.vmem %s1051_s14, 256  ;;  %p1053_p12 = scmp.lt.s32.totalorder %s1409_s11, %s1051_s14 }
  0x79   : > { %p1048_p7 = pnand %p1046_p5, %p1032_p2  ;;  %p1054_p0 = scmp.lt.s32.totalorder %s1052_s12, %s1045_s17 }
  0x7b   : > { %p1049_p8 = pneg %p1048_p7  ;;  %p1055_p4 = por %p1054_p0, %p1053_p12 }
  0x7d   : > { %p1056_p6 = pnand %p1055_p4, %p1049_p8 }
  0x7f   : > { %1059 = shalt.err (!%p1056_p6)
}
  0x80   : > { %860 = dma.hbm_to_vmem [thread:$0]  (!%p1415_p9), %s1407_s13, 128, %s1409_s11, %s229_s21  }
  0x81   : > { %p1595_p1 = scmp.ne.s32.totalorder %s1588_s10, 0 }
  0x82   : > { %s252_s29 = sand.u32 (!%p1595_p1), 1, %s1162_s22   ;;  %p1596_p2 = scmp.ne.s32.totalorder (!%p1595_p1), %s1583_s7, 0 }
  0x83   : > { %250 = sbr.rel (%p1595_p1) target bundleno = 1232 (0x4d0), region = 40  ;;  %s1447_s4 = sshll.u32 (!%p1595_p1), %s252_s29, 3 }
  0x84   : > { %s253_s1 = scalar_lea.sflag (!%p1595_p1), [#allocation7], %s252_s29  ;;  %s256_s3 = scalar_lea.vmem (!%p1595_p1), [#allocation6], %s1447_s4 }
  0x8a   : > { %1133 = dma.done.wait (%p1596_p2), %s253_s1, 128  }
  0x8b   : > { %1135 = vsyncadd (%p1596_p2), %s253_s1, 4294967168  ;;  %p1597_p10 = scmp.ne.s32.totalorder %s1582_s6, 0 }
  0x8d   : > { %1137 = dma.done.wait (%p1597_p10), [#allocation10], 1152  }
  0x8e   : > { %1139 = vsyncadd (%p1597_p10), [#allocation10], 4294966144  ;;  %s288_s10 = sand.u32 1, %s1150_s19   ;;  %p295_p9 = scmp.eq.s32.totalorder %s1174_s25, 0 }
  0x8f   : > { %s1462_s13 = sshll.u32 %s288_s10, 3  ;;  %p296_p13 = scmp.eq.s32.totalorder %s1170_s24, 0 }
  0x90   : > { %s290_s7 = scalar_lea.vmem [#allocation12], %s1462_s13 }
  0x91   : > { %p297_p11 = pnand %p296_p13, %p295_p9 }
  0x92   : > { %vm301_vm0 = vcmask (!%p297_p11), 320512   ;;  %v1193_v0 = vmov (!%p297_p11), 0.0  }
  0x93   : > { %300 = sbr.rel (%p297_p11) target bundleno = 154 (0x9a), region = 56  ;;  %302 = vst.msk [vmem:[#allocation4] sm:$0x3] (!%p297_p11), %vm301_vm0, %v1193_v0  ;;  %303 = vst [vmem:[#allocation5] sm:$0x3] (!%p297_p11), %v1193_v0 }
  0x9a PF: > { %s1467_s6 = sshll.u32 %s1170_s24, 3  ;;  %v305_v1 = vlaneseq  ;;  %p768_p3 = scmp.ne.s32.totalorder %s1174_s25, 0 }
  0x9b   : > { %v307_v2 = vstv %s1467_s6  ;;  %v314_v5 = vld [vmem:[#allocation9] sm:$0xff] (!%p768_p3)  ;;  %v315_v6 = vld [vmem:[#allocation9 + $0x8] sm:$0xff] (!%p768_p3)  ;;  %v316_v7 = vld [vmem:[#allocation9 + $0x10] sm:$0xff] (!%p768_p3)  ;;  %v1194_v8 = vmov (!%p768_p3), 0.0|0.0   ;;  %vm1195_vm2 = vmmov (!%p768_p3), 0   ;;  %v1196_v11 = vmov (!%p768_p3), 0.0  }
  0x9c   : > { %v306_v3 = vshrl.u32 %v305_v1, 7  ;;  %312 = sbr.rel (%p768_p3) target bundleno = 400 (0x190), region = 60  ;;  %814 = vmatprep.subr.bf16.mxu0 (!%p768_p3), %v1194_v8  ;;  %v815_v9 = vpack.c.bf16 (!%p768_p3), %v315_v6, %v314_v5  ;;  %v317_v10 = vld [vmem:[#allocation9 + $0x18] sm:$0xff] (!%p768_p3)  ;;  %798 = vmatprep.mubr.msk.f32.mxu0 (!%p768_p3), %vm1195_vm2, %v1196_v11  ;;  %vm325_vm3 = vcmask (!%p768_p3), 261120   ;;  %vm401_vm4 = vcmask (!%p768_p3), 326656   ;;  %s400_s21 = scalar_lea.vmem (!%p768_p3), [#allocation2], %s1467_s6 }
  0x9d   : > { %v818_v12 = vpack.c.bf16 (!%p768_p3), %v317_v10, %v316_v7  ;;  %v313_v13 = vld [vmem:[%s256_s3] sm:$0xff] (!%p768_p3)  ;;  %v406_v32 = vld [vmem:[#allocation4] sm:$0x1] (!%p768_p3)  ;;  %vm415_vm5 = vcmask (!%p768_p3), 319488   ;;  %v417_v35 = vld [vmem:[#allocation4 + $0x1] sm:$0x1] (!%p768_p3) }
  0x9e   : > { %v1470_v4 = vadd.s32 %v307_v2, %v306_v3  ;;  %816 = vmatpush3.bf16.msra.mxu0 (!%p768_p3), %v815_v9  ;;  %v769_v14 = vld [vmem:[%s1560_s2] ss:$0 sm:$0xff] (!%p768_p3) }
  0x9f   : > { %817 = vmatprep.subr.bf16.mxu0 (!%p768_p3), %v1194_v8 }
  0xa0   : > { %vm309_vm1 = vcmp.lt.s32.totalorder %v1470_v4, 20 }
  0xa2   : > { %819 = vmatpush3.bf16.msra.mxu0 (!%p768_p3), %v818_v12 }
  0xa5   : > { %799 = vmatmul.mubr.msk.f32.vlgmr.msra.gmra.mrb[0].mxu0 %vm325_vm3, %v313_v13 }
 0x178   : > { %v395_v15 = vpop.f32.mrb[0].mxu0 }
 0x179   : > { %v396_v16 = vadd.f32 %v769_v14, %v395_v15  ;;  %v800_v17 = vpop.f32.mrb[1].mxu0 }
 0x17b   : > { %v399_v18 = vmax.f32 %v396_v16, 0.0 }
 0x17d   : > { %402 = vst.msk [vmem:[%s400_s21] sm:$0xff] %vm401_vm4, %v399_v18  ;;  %v405_v19 = vsel %vm309_vm1, %v399_v18, 0.0 }
 0x17e   : > { %v407_v20 = vsel %vm401_vm4, %v405_v19, 0.0  ;;  %v418_v21 = vmul.f32 %v405_v19, %v405_v19 }
 0x17f   : > { %v408_v22 = vrot.slane %v407_v20, 4 }
 0x180   : > { %v419_v23 = vsel %vm401_vm4, %v418_v21, 0.0 }
 0x181   : > { %v409_v24 = vadd.f32 %v408_v22, %v407_v20  ;;  %v420_v25 = vrot.slane %v419_v23, 4 }
 0x183   : > { %v410_v26 = vrot.slane %v409_v24, 2  ;;  %v421_v27 = vadd.f32 %v420_v25, %v419_v23 }
 0x185   : > { %v411_v28 = vadd.f32 %v410_v26, %v409_v24  ;;  %v422_v29 = vrot.slane %v421_v27, 2 }
 0x187   : > { %v412_v30 = vrot.slane %v411_v28, 1  ;;  %v423_v31 = vadd.f32 %v422_v29, %v421_v27 }
 0x189   : > { %v413_v33 = vadd.f32 %v412_v30, %v411_v28  ;;  %v424_v34 = vrot.slane %v423_v31, 1 }
 0x18b   : > { %v414_v36 = vadd.f32 %v413_v33, %v406_v32  ;;  %v425_v37 = vadd.f32 %v424_v34, %v423_v31 }
 0x18d   : > { %416 = vst.msk [vmem:[#allocation4] sm:$0x1] %vm415_vm5, %v414_v36  ;;  %v426_v38 = vadd.f32 %v425_v37, %v417_v35 }
 0x18f   : > { %427 = vst.msk [vmem:[#allocation4 + $0x1] sm:$0x1] %vm415_vm5, %v426_v38 }
 0x190 PF: > { %p771_p5 = scmp.ne.s32.totalorder %s1174_s25, 1 }
 0x191   : > { %vm433_vm6 = vcmask (!%p771_p5), 319488   ;;  %v473_v43 = vld [vmem:[#allocation11] sm:$0xff] (!%p771_p5)  ;;  %v474_v44 = vld [vmem:[#allocation11 + $0x8] sm:$0xff] (!%p771_p5)  ;;  %v475_v45 = vld [vmem:[#allocation11 + $0x10] sm:$0xff] (!%p771_p5)  ;;  %v1197_v46 = vmov (!%p771_p5), 0.0|0.0   ;;  %v1198_v58 = vmov (!%p771_p5), 0.0  }
 0x192   : > { %431 = sbr.rel (%p771_p5) target bundleno = 919 (0x397), region = 64  ;;  %820 = vmatprep.subr.bf16.mxu0 (!%p771_p5), %v1197_v46  ;;  %v821_v47 = vpack.c.bf16 (!%p771_p5), %v474_v44, %v473_v43  ;;  %v476_v48 = vld [vmem:[#allocation11 + $0x18] sm:$0xff] (!%p771_p5)  ;;  %v477_v59 = vld [vmem:[#allocation11 + $0x20] sm:$0xff] (!%p771_p5)  ;;  %vm1199_vm7 = vmmov (!%p771_p5), 0   ;;  %s467_s29 = scalar_lea.vmem (!%p771_p5), [#allocation2], %s1467_s6  ;;  %vm485_vm8 = vcmask (!%p771_p5), 326656  }
 0x193   : > { %v824_v49 = vpack.c.bf16 (!%p771_p5), %v476_v48, %v475_v45  ;;  %811 = vmatprep.mubr.msk.f32.mxu0 (!%p771_p5), %vm1199_vm7, %v1198_v58  ;;  %v468_v6 = vld [vmem:[%s467_s29] sm:$0xff] (!%p771_p5)  ;;  %s1598_s11 = sld [smem:[#allocation23_spill]] (!%p771_p5)  ;;  %s560_s9 = scalar_lea.vmem (!%p771_p5), [#allocation3], %s1467_s6  ;;  %v565_v26 = vld [vmem:[#allocation5] sm:$0x1] (!%p771_p5) }
 0x194   : > { %v432_v39 = vld [vmem:[#allocation4] sm:$0x1] (!%p771_p5)  ;;  %822 = vmatpush3.bf16.msra.mxu0 (!%p771_p5), %v821_v47  ;;  %v574_v29 = vld [vmem:[#allocation5 + $0x1] sm:$0x1] (!%p771_p5) }
 0x195   : > { %v434_v41 = vsel (!%p771_p5), %vm433_vm6, %v432_v39, 0.0  ;;  %823 = vmatprep.subr.bf16.mxu0 (!%p771_p5), %v1197_v46 }
 0x196   : > { %v444_v40 = vld [vmem:[#allocation4 + $0x1] sm:$0x1] (!%p771_p5)  ;;  %435 = vadd.xlane.f32.xlu0 (!%p771_p5), %v434_v41 }
 0x197   : > { %v445_v42 = vsel (!%p771_p5), %vm433_vm6, %v444_v40, 0.0 }
 0x198   : > { %825 = vmatpush3.bf16.msra.mxu0 (!%p771_p5), %v824_v49 }
 0x199   : > { %809 = vmatprep.subr.mxu0 %v1198_v58  ;;  %v772_v10 = vld [vmem:[%s1598_s11] ss:$0 sm:$0xff] }
 0x19a   : > { %446 = vadd.xlane.f32.xlu0 %v445_v42 }
 0x19c   : > { %810 = vmatpush3.msra.mxu0 %v477_v59 }
 0x223   : > { %v436_v50 = vpop.xlane.xlu0 %435 }
 0x224   : > { %v437_v51 = vrot.slane %v436_v50, 4 }
 0x226   : > { %v438_v52 = vadd.f32 %v437_v51, %v436_v50 }
 0x227   : > { %v447_v53 = vpop.xlane.xlu0 %446 }
 0x228   : > { %v439_v54 = vrot.slane %v438_v52, 2  ;;  %v448_v55 = vrot.slane %v447_v53, 4 }
 0x22a   : > { %v449_v56 = vadd.f32 %v448_v55, %v447_v53  ;;  %v440_v57 = vadd.f32 %v439_v54, %v438_v52 }
 0x22c   : > { %v450_v60 = vrot.slane %v449_v56, 2  ;;  %v441_v61 = vrot.slane %v440_v57, 1 }
 0x22e   : > { %v451_v62 = vadd.f32 %v450_v60, %v449_v56  ;;  %v442_v63 = vadd.f32 %v441_v61, %v440_v57 }
 0x230   : > { %826 = vpush %v442_v63  ;;  %v452_v0 = vrot.slane %v451_v62, 1 }
 0x232   : > { %v453_v1 = vadd.f32 %v452_v0, %v451_v62 }
 0x234   : > { %828 = vpush %v453_v1 }
 0x261   : > { %s827_s27 = spop %826 }
 0x262   : > { %s457_s15 = smul.f32 0.00125, %s827_s27 }
 0x264   : > { %s461_s16 = smul.f32 %s457_s15, %s457_s15  ;;  %v469_v5 = vstv %s457_s15 }
 0x265   : > { %s829_s17 = spop %828  ;;  %v470_v7 = vsub.f32 %v468_v6, %v469_v5 }
 0x266   : > { %s460_s30 = smul.f32 0.00125, %s829_s17 }
 0x268   : > { %s462_s14 = ssub.f32 %s460_s30, %s461_s16 }
 0x26a   : > { %s463_s12 = sadd.f32 1e-05, %s462_s14 }
 0x26c   : > { %v464_v2 = vstv %s463_s12 }
 0x26d   : > { %970 = vrsqrt.f32 %v464_v2 }
 0x277   : > { %v971_v3 = vpop.eup %970 }
 0x278   : > { %830 = vpush %v971_v3 }
 0x2a9   : > { %s831_s4 = spop %830 }
 0x2aa   : > { %v471_v8 = vstv %s831_s4 }
 0x2ab   : > { %v472_v9 = vmul.f32 %v471_v8, %v470_v7 }
 0x2ad   : > { %812 = vmatmul.mubr.msk.f32.vlgmr.msra.gmra.mrb[0].mxu0 %vm485_vm8, %v472_v9 }
 0x380   : > { %v555_v11 = vpop.f32.mrb[0].mxu0 }
 0x381   : > { %v556_v12 = vadd.f32 %v772_v10, %v555_v11  ;;  %v813_v13 = vpop.f32.mrb[1].mxu0 }
 0x383   : > { %v559_v14 = vmax.f32 %v556_v12, 0.0 }
 0x385   : > { %561 = vst [vmem:[%s560_s9] sm:$0xff] %v559_v14  ;;  %v564_v15 = vsel %vm309_vm1, %v559_v14, 0.0 }
 0x386   : > { %v566_v16 = vrot.slane %v564_v15, 4  ;;  %v575_v17 = vmul.f32 %v564_v15, %v564_v15 }
 0x388   : > { %v567_v18 = vadd.f32 %v566_v16, %v564_v15  ;;  %v576_v19 = vrot.slane %v575_v17, 4 }
 0x38a   : > { %v568_v20 = vrot.slane %v567_v18, 2  ;;  %v577_v21 = vadd.f32 %v576_v19, %v575_v17 }
 0x38c   : > { %v569_v22 = vadd.f32 %v568_v20, %v567_v18  ;;  %v578_v23 = vrot.slane %v577_v21, 2 }
 0x38e   : > { %v570_v24 = vrot.slane %v569_v22, 1  ;;  %v579_v25 = vadd.f32 %v578_v23, %v577_v21 }
 0x390   : > { %v571_v27 = vadd.f32 %v570_v24, %v569_v22  ;;  %v580_v28 = vrot.slane %v579_v25, 1 }
 0x392   : > { %v572_v30 = vadd.f32 %v571_v27, %v565_v26  ;;  %v581_v31 = vadd.f32 %v580_v28, %v579_v25 }
 0x394   : > { %573 = vst [vmem:[#allocation5] sm:$0x1] %v572_v30  ;;  %v582_v32 = vadd.f32 %v581_v31, %v574_v29 }
 0x396   : > { %583 = vst [vmem:[#allocation5 + $0x1] sm:$0x1] %v582_v32 }
 0x397 PF: > { %p774_p7 = scmp.ne.s32.totalorder %s1174_s25, 2 }
 0x398   : > { %vm589_vm9 = vcmask (!%p774_p7), 1040384   ;;  %s623_s12 = scalar_lea.vmem (!%p774_p7), [#allocation3], %s1467_s6 }
 0x399   : > { %587 = sbr.rel (%p774_p7) target bundleno = 1205 (0x4b5), region = 68  ;;  %v624_v53 = vld [vmem:[%s623_s12] sm:$0xff] (!%p774_p7) }
 0x39b   : > { %v588_v4 = vld [vmem:[#allocation5] sm:$0x1] (!%p774_p7) }
 0x39c   : > { %v590_v34 = vsel (!%p774_p7), %vm589_vm9, %v588_v4, 0.0 }
 0x39d   : > { %v600_v33 = vld [vmem:[#allocation5 + $0x1] sm:$0x1] (!%p774_p7)  ;;  %591 = vadd.xlane.f32.xlu0 (!%p774_p7), %v590_v34 }
 0x39e   : > { %v601_v35 = vsel (!%p774_p7), %vm589_vm9, %v600_v33, 0.0 }
 0x3a1   : > { %602 = vadd.xlane.f32.xlu0 %v601_v35 }
 0x42a   : > { %v592_v36 = vpop.xlane.xlu0 %591 }
 0x42b   : > { %v593_v37 = vrot.slane %v592_v36, 4 }
 0x42d   : > { %v594_v38 = vadd.f32 %v593_v37, %v592_v36 }
 0x42e   : > { %v603_v39 = vpop.xlane.xlu0 %602 }
 0x42f   : > { %v595_v40 = vrot.slane %v594_v38, 2  ;;  %v604_v41 = vrot.slane %v603_v39, 4 }
 0x431   : > { %v605_v42 = vadd.f32 %v604_v41, %v603_v39  ;;  %v596_v43 = vadd.f32 %v595_v40, %v594_v38 }
 0x433   : > { %v606_v44 = vrot.slane %v605_v42, 2  ;;  %v597_v45 = vrot.slane %v596_v43, 1 }
 0x435   : > { %v607_v46 = vadd.f32 %v606_v44, %v605_v42  ;;  %v598_v47 = vadd.f32 %v597_v45, %v596_v43 }
 0x437   : > { %832 = vpush %v598_v47  ;;  %v608_v48 = vrot.slane %v607_v46, 1 }
 0x439   : > { %v609_v49 = vadd.f32 %v608_v48, %v607_v46 }
 0x43b   : > { %834 = vpush %v609_v49 }
 0x468   : > { %s833_s21 = spop %832 }
 0x469   : > { %s613_s27 = smul.f32 0.0011111111, %s833_s21 }
 0x46b   : > { %s617_s15 = smul.f32 %s613_s27, %s613_s27  ;;  %v625_v52 = vstv %s613_s27 }
 0x46c   : > { %s835_s16 = spop %834  ;;  %v626_v54 = vsub.f32 %v624_v53, %v625_v52 }
 0x46d   : > { %s616_s17 = smul.f32 0.0011111111, %s835_s16 }
 0x46f   : > { %s618_s30 = ssub.f32 %s616_s17, %s617_s15 }
 0x471   : > { %s619_s14 = sadd.f32 1e-05, %s618_s30 }
 0x473   : > { %v620_v50 = vstv %s619_s14 }
 0x474   : > { %972 = vrsqrt.f32 %v620_v50 }
 0x47e   : > { %v973_v51 = vpop.eup %972 }
 0x47f   : > { %836 = vpush %v973_v51 }
 0x4b0   : > { %s837_s29 = spop %836 }
 0x4b1   : > { %v627_v55 = vstv %s837_s29 }
 0x4b2   : > { %v628_v56 = vmul.f32 %v627_v55, %v626_v54 }
 0x4b4   : > { %629 = vst [vmem:[%s290_s7] sm:$0xff] %v628_v56 }
 0x4b5 PF: > { %s1599_s4 = sld [smem:[#allocation18_spill]]  ;;  %p638_p8 = scmp.eq.s32.totalorder %s1174_s25, 2 }
 0x4b6   : > { %s646_s1 = sshll.u32 %s290_s7, 4  ;;  %s1600_s9 = sld [smem:[#allocation24_spill]]  ;;  %s1498_s1 = int_to_ptr.vmem [resolvable:$true] %s646_s1 }
 0x4b7   : > { %s1623_s24 = smov (!%p638_p8, %s1170_s24), 0  ;;  %s631_s27 = scalar_lea.sflag [#allocation8], %s288_s10 }
 0x4b8   : > { %s776_s6 = sshll.u32 %s1623_s24, 7  ;;  %s1060_s15 = scalar_lea.vmem %s1498_s1, 128 }
 0x4b9   : > { %p1061_p12 = scmp.ne.s32.totalorder %s1498_s1, %s1060_s15  ;;  %s1200_s25 = smov [#allocation12]  }
 0x4ba   : > { %s1064_s13 = sshll.u32 %s1200_s25, 4  ;;  %s1065_s13 = int_to_ptr.vmem [resolvable:$false] %s1064_s13 }
 0x4bb   : > { %p1601_p0 = scmp.ne.s32.totalorder %s1599_s4, 0  ;;  %s1066_s7 = scalar_lea.vmem %s1065_s13, 256 }
 0x4bc   : > { %s644_s21 = scalar_lea.hbm %s1600_s9, %s776_s6  ;;  %p1067_p1 = scmp.lt.s32.totalorder %s1498_s1, %s1065_s13 }
 0x4bd   : > { %p1062_p4 = pnand %p1061_p12, %p1601_p0  ;;  %p1068_p2 = scmp.lt.s32.totalorder %s1066_s7, %s1060_s15 }
 0x4bf   : > { %p1063_p6 = pneg %p1062_p4  ;;  %p1069_p10 = por %p1068_p2, %p1067_p1 }
 0x4c1   : > { %p1070_p9 = pnand %p1069_p10, %p1063_p6 }
 0x4c3   : > { %1073 = shalt.err (!%p1070_p9)
}
 0x4c4   : > { %s1074_s24 = scalar_lea.hbm %s644_s21, 128  ;;  %s1078_s17 = scalar_lea.hbm %s1600_s9, 384 }
 0x4c5   : > { %p1075_p13 = scmp.ne.s32.totalorder %s644_s21, %s1074_s24  ;;  %p1079_p5 = scmp.lt.u32.totalorder %s644_s21, %s1600_s9 }
 0x4c6   : > { %p1080_p7 = scmp.lt.u32.totalorder %s1078_s17, %s1074_s24  ;;  %p1082_p12 = scmp.lt.u32.totalorder %s1074_s24, %s644_s21 }
 0x4c7   : > { %p1076_p11 = pnand %p1075_p13, %p1601_p0 }
 0x4c8   : > { %p1081_p8 = por %p1080_p7, %p1079_p5 }
 0x4c9   : > { %p1077_p3 = pneg %p1076_p11 }
 0x4ca   : > { %p1083_p4 = por %p1082_p12, %p1081_p8 }
 0x4cc   : > { %p1084_p6 = pnand %p1083_p4, %p1077_p3 }
 0x4ce   : > { %1087 = shalt.err (!%p1084_p6)
}
 0x4cf   : > { %848 = dma.vmem_to_hbm [thread:$0]  (%p1601_p0), %s1498_s1, 128, %s644_s21, %s631_s27  }
 0x4d0 PF: > { %s1602_s12 = sld [smem:[#allocation16_spill]]  ;;  %s1603_s29 = sld [smem:[#allocation19_spill]] }
 0x4d1   : > { %p870_p1 = scmp.ge.s32.totalorder %s1186_s28, 2 }
 0x4d6   : > { %s658_s6 = sand.u32 1, %s1602_s12   ;;  %p1604_p2 = scmp.ne.s32.totalorder %s1603_s29, 0 }
 0x4d7   : > { %s659_s3 = scalar_lea.sflag [#allocation8], %s658_s6 }
 0x4d8   : > { %p862_p10 = pnand %p870_p1, %p1604_p2 }
 0x4da   : > { %1141 = dma.done.wait (!%p862_p10), %s659_s3, 128  }
 0x4db   : > { %1143 = vsyncadd (!%p862_p10), %s659_s3, 4294967168  ;;  %s22_s28 = sadd.s32 1, %s1186_s28   ;;  %s1605_s11 = smov %s1402_s18 }
 0x4dc   : > { %p19_p9 = scmp.ge.s32.totalorder %s22_s28, 11   ;;  %s1606_s25 = sld [smem:[#allocation17_spill]] }
 0x4dd   : > { %s1607_s27 = sld [smem:[#allocation20_spill]]  ;;  %s1608_s18 = smov %s1150_s19 }
 0x4de   : > { %s1609_s19 = smov %s1154_s20  ;;  %s1610_s20 = smov %s1605_s11 }
 0x4df   : > { %s1611_s21 = smov %s1162_s22  ;;  %s1612_s22 = smov %s1166_s23 }
 0x4e0   : > { %s1613_s23 = smov %s1399_s5  ;;  %s1614_s24 = smov %s1178_s26 }
 0x4e1   : > { %s1615_s26 = smov %s1617_s8  ;;  %21 = sbr.rel (!%p19_p9) target bundleno = 15 (0xf), region = 113 }
 0x4e8   :  { %664 = vsyncpa [#allocation7], 1 }
 0x4e9   :  { %666 = vsyncpa [#allocation7 + $0x1], 1 }
 0x4ea   :  { %667 = vsyncpa [#allocation10], 1 }
 0x4eb   :  { %668 = vsyncpa [#allocation8], 1 }
 0x4ec   :  { %670 = vsyncpa [#allocation8 + $0x1], 1 }

</bundles_post_ra>
